<compile_context>
chip_gen: v7x
topology: tpu7x:2x2x1
jax: 0.10.0
libtpu: 0.0.40
codegen_flags: <defaults>
</compile_context>

<pallas_src>
import functools
import math

import jax
import jax.numpy as jnp
import numpy as np
from jax import lax
from jax.experimental import pallas as pl
from jax.experimental.pallas import tpu as pltpu


# --------------------------------------------------------------------------- #
# Kernel
# --------------------------------------------------------------------------- #
def _layernorm(x, w, b, eps=1e-5):
    mu = jnp.mean(x, axis=-1, keepdims=True)
    var = jnp.mean(jnp.square(x - mu), axis=-1, keepdims=True)
    return (x - mu) * lax.rsqrt(var + eps) * w + b


def _self_attn_block_kernel(n_head, nb, seq_len, n_mlp_chunks,
                            x_ref, bias_ref,
                            ln1w_ref, ln1b_ref,
                            wqkv_ref, bqkv_ref,
                            wo_ref, bo_ref,
                            ln2w_ref, ln2b_ref,
                            wfc_ref, bfc_ref,
                            wpr_ref, bpr_ref,
                            out_ref,
                            attn_scr):
    rows, d_model = x_ref.shape            # rows = nb * seq_len (multiple of 8)
    hd = d_model // n_head

    x = x_ref[...].astype(jnp.float32)     # (rows, D) fp32 residual stream

    # ---- ln_1 (fp32) ----
    xn = _layernorm(x, ln1w_ref[...], ln1b_ref[...])

    # ---- fused QKV projection: one (rows, D) @ (D, 3D) matmul, fp32 accum,
    #      then immediately downcast to bf16 (only bf16 matmuls consume it) ----
    qkv = (jnp.dot(xn.astype(jnp.bfloat16), wqkv_ref[...],
                   preferred_element_type=jnp.float32)
           + bqkv_ref[...]).astype(jnp.bfloat16)          # (rows, 3D) bf16

    bias = bias_ref[...]                                   # (L, L) additive mask

    # ---- multi-head attention: static loop over heads, batched over nb ----
    # 1/sqrt(hd) is already folded into Wq / bq on the host.
    for h in range(n_head):
        c0 = h * hd
        q = qkv[:, c0:c0 + hd].reshape(nb, seq_len, hd)
        k = qkv[:, d_model + c0:d_model + c0 + hd].reshape(nb, seq_len, hd)
        v = qkv[:, 2 * d_model + c0:2 * d_model + c0 + hd].reshape(nb, seq_len, hd)

        s = jnp.einsum("bqd,bkd->bqk", q, k,
                       preferred_element_type=jnp.float32) + bias   # (nb, L, L)
        m = jnp.max(s, axis=-1, keepdims=True)
        p = jnp.exp(s - m)
        inv_l = pl.reciprocal(jnp.sum(p, axis=-1, keepdims=True), approx=True)
        o = jnp.einsum("bqk,bkd->bqd", p.astype(jnp.bfloat16), v,
                       preferred_element_type=jnp.float32)           # (nb, L, hd)
        o = o * inv_l
        attn_scr[:, c0:c0 + hd] = o.reshape(rows, hd).astype(jnp.bfloat16)

    # ---- output projection over the whole (rows, D) block + residual 1 ----
    proj = jnp.dot(attn_scr[...], wo_ref[...],
                   preferred_element_type=jnp.float32) + bo_ref[...]
    x1 = x + proj

    # ---- ln_2 + MLP (c_fc -> QuickGELU -> c_proj, hidden tiled) + residual 2 ----
    xn2 = _layernorm(x1, ln2w_ref[...], ln2b_ref[...]).astype(jnp.bfloat16)
    d_ff = wfc_ref.shape[1]
    chunk = d_ff // n_mlp_chunks
    y = x1 + bpr_ref[...]                                  # residual + c_proj bias
    for c in range(n_mlp_chunks):
        a, b = c * chunk, (c + 1) * chunk
        hcol = jnp.dot(xn2, wfc_ref[:, a:b],
                       preferred_element_type=jnp.float32) + bfc_ref[:, a:b]
        hcol = hcol * jax.nn.sigmoid(1.702 * hcol)          # QuickGELU (fp32)
        y = y + jnp.dot(hcol.astype(jnp.bfloat16), wpr_ref[a:b, :],
                        preferred_element_type=jnp.float32)
    out_ref[...] = y.astype(out_ref.dtype)


# --------------------------------------------------------------------------- #
# Host-side parameter / blocking helpers
# --------------------------------------------------------------------------- #
def init_params(key, d_model, n_head):
    """Deterministic synthetic parameters matching nn.MultiheadAttention / the MLP."""
    ks = jax.random.split(key, 8)
    s = 0.02
    return {
        "ln1_w": jnp.ones((1, d_model), jnp.float32),
        "ln1_b": jnp.zeros((1, d_model), jnp.float32),
        "wq": s * jax.random.normal(ks[0], (d_model, d_model), jnp.float32),
        "wk": s * jax.random.normal(ks[1], (d_model, d_model), jnp.float32),
        "wv": s * jax.random.normal(ks[2], (d_model, d_model), jnp.float32),
        "bq": s * jax.random.normal(ks[3], (1, d_model), jnp.float32),
        "bk": s * jax.random.normal(ks[4], (1, d_model), jnp.float32),
        "bv": s * jax.random.normal(ks[5], (1, d_model), jnp.float32),
        "wo": s * jax.random.normal(ks[6], (d_model, d_model), jnp.float32),
        "bo": jnp.zeros((1, d_model), jnp.float32),
        "ln2_w": jnp.ones((1, d_model), jnp.float32),
        "ln2_b": jnp.zeros((1, d_model), jnp.float32),
        "wfc": s * jax.random.normal(ks[7], (4 * d_model, d_model), jnp.float32),
        "bfc": jnp.zeros((1, 4 * d_model), jnp.float32),
        "wpr": s * jax.random.normal(jax.random.fold_in(key, 99),
                                     (d_model, 4 * d_model), jnp.float32),
        "bpr": jnp.zeros((1, d_model), jnp.float32),
    }


def _prepare_kernel_params(params, n_head):
    """One-time host-side weight fusion / transposition / bf16 cast."""
    d_model = params["wq"].shape[0]
    scale = 1.0 / math.sqrt(d_model // n_head)
    wq = params["wq"] * scale            # fold 1/sqrt(hd) into Wq and bq
    bq = params["bq"] * scale

    def f32(a): return a.astype(jnp.float32)
    def bf16(a): return a.astype(jnp.bfloat16)

    wqkv_t = bf16(jnp.concatenate([wq.T, params["wk"].T, params["wv"].T], axis=1))
    bqkv = f32(jnp.concatenate([bq, params["bk"], params["bv"]], axis=1))
    return [
        f32(params["ln1_w"]), f32(params["ln1_b"]),
        wqkv_t, bqkv,                               # (D, 3D) bf16 / (1, 3D) f32
        bf16(params["wo"].T), f32(params["bo"]),    # (D, D)  bf16 / (1, D)  f32
        f32(params["ln2_w"]), f32(params["ln2_b"]),
        bf16(params["wfc"].T), f32(params["bfc"]),  # (D, 4D) bf16 / (1, 4D) f32
        bf16(params["wpr"].T), f32(params["bpr"]),  # (4D, D) bf16 / (1, D)  f32
    ]


def _pick_mlp_chunks(rows, d_model, target_bytes=4 << 20):
    """Lane-aligned column chunking of the 4*D MLP hidden dim."""
    d_ff = 4 * d_model
    n = 1
    for cand in (2, 4, 8):
        chunk = d_ff // cand
        if d_ff % cand == 0 and chunk % 128 == 0 and rows * (d_ff // n) * 4 > target_bytes:
            n = cand
    return n


def _vmem_bytes_estimate(nb, seq_len, d_model, n_head, n_chunks):
    rows, hd, d_ff = nb * seq_len, d_model // n_head, 4 * d_model
    weights = (3 * d_model * d_model + d_model * d_model + 2 * d_model * d_ff) * 2
    weights += (2 * d_model + 3 * d_model + d_model + 2 * d_model + d_ff + d_model) * 4
    mask = seq_len * seq_len * 4
    io = 2 * 2 * rows * d_model * 2                      # in+out blocks, double-buffered bf16
    resid = 2 * rows * d_model * 4                       # x, x1 fp32
    qkv = rows * 3 * d_model * 2                         # bf16
    scr = rows * d_model * 2                             # attention scratch bf16
    attn_tmp = nb * seq_len * seq_len * (4 + 2) + nb * seq_len * hd * 4
    mlp_tmp = rows * (d_ff // n_chunks) * (4 + 2) + rows * d_model * 4
    return weights + mask + io + resid + qkv + scr + attn_tmp + mlp_tmp


def _pick_blocking(n_batch, seq_len, d_model, n_head, vmem_budget, max_nb=8):
    """Largest batch-block that fits the VMEM budget; keep >=2 grid steps if possible."""
    nb = 1
    nc = _pick_mlp_chunks(seq_len, d_model)
    for c in range(1, min(n_batch, max_nb) + 1):
        if n_batch % c:
            continue
        c_nc = _pick_mlp_chunks(c * seq_len, d_model)
        if _vmem_bytes_estimate(c, seq_len, d_model, n_head, c_nc) <= vmem_budget:
            nb, nc = c, c_nc
    if n_batch // nb < 2:                                # use both TCs / pipeline on v7x
        for c in range(nb - 1, 0, -1):
            if n_batch % c == 0:
                nb, nc = c, _pick_mlp_chunks(c * seq_len, d_model)
                break
    return nb, nc


def _build_attn_bias(seq_len, seq_len_pad, attn_mask):
    """Additive (L_pad, L_pad) fp32 bias: optional causal mask + padded-key mask."""
    bias = jnp.zeros((seq_len_pad, seq_len_pad), jnp.float32)
    if attn_mask is not None:
        bias = bias.at[:seq_len, :seq_len].set(jnp.asarray(attn_mask, jnp.float32))
    if seq_len_pad != seq_len:
        bias = bias.at[:, seq_len:].set(-1e30)
    return bias


# --------------------------------------------------------------------------- #
# Wrapper
# --------------------------------------------------------------------------- #
def self_attention_forward(x_lnd, params, n_head, attn_mask=None,
                           compound_prompt_nctx=2, text_layer=False, max_nb=8):
    """x_lnd: (L, N, D) like torch MultiheadAttention. Returns (x, context)."""
    L, N, D = x_lnd.shape
    orig_dtype = x_lnd.dtype
    L_pad = ((L + 7) // 8) * 8

    # Generation-aware VMEM budget (128 MiB on v5e/v6e, 64 MiB on v7x).
    try:
        vmem_cap = int(getattr(pltpu.get_tpu_info(), "vmem_capacity_bytes", 64 << 20))
    except Exception:
        vmem_cap = 64 << 20
    nb, n_chunks = _pick_blocking(N, L_pad, D, n_head,
                                  vmem_budget=int(0.70 * vmem_cap), max_nb=max_nb)
    rows = nb * L_pad

    # (L, N, D) -> pad L -> (N, L_pad, D) -> (N*L_pad, D), bf16 at the boundary.
    x = x_lnd
    if L_pad != L:
        x = jnp.concatenate([x, jnp.zeros((L_pad - L, N, D), x.dtype)], axis=0)
    x2d = jnp.transpose(x, (1, 0, 2)).reshape(N * L_pad, D).astype(jnp.bfloat16)

    bias = _build_attn_bias(L, L_pad, attn_mask)
    plist = _prepare_kernel_params(params, n_head)

    est = _vmem_bytes_estimate(nb, L_pad, D, n_head, n_chunks)
    vmem_limit = int(est * 1.3) + (8 << 20)
    vmem_limit = max(32 << 20, min(vmem_limit, int(0.9 * vmem_cap)))

    kernel = functools.partial(_self_attn_block_kernel, n_head, nb, L_pad, n_chunks)
    # whole-array, single-buffered VMEM residency for mask + weights
    vmem_specs = [pl.BlockSpec(memory_space=pltpu.MemorySpace.VMEM)
                  for _ in range(1 + len(plist))]

    out2d = pl.pallas_call(
        kernel,
        out_shape=jax.ShapeDtypeStruct((N * L_pad, D), jnp.bfloat16),
        grid=(N // nb,),
        in_specs=[pl.BlockSpec((rows, D), lambda n: (n, 0))] + vmem_specs,
        out_specs=pl.BlockSpec((rows, D), lambda n: (n, 0)),
        scratch_shapes=[pltpu.VMEM((rows, D), jnp.bfloat16)],
        compiler_params=pltpu.CompilerParams(
            dimension_semantics=("parallel",),
            vmem_limit_bytes=vmem_limit),
    )(x2d, bias, *plist)

    out_lnd = (out2d.reshape(N, L_pad, D).transpose(1, 0, 2)[:L]).astype(orig_dtype)
    if text_layer:
        context = out_lnd[1:1 + compound_prompt_nctx]
    else:
        context = out_lnd[-compound_prompt_nctx:]
    return out_lnd, context


# --------------------------------------------------------------------------- #
# Pure-JAX fp32 reference (for verification)
# --------------------------------------------------------------------------- #
def _reference_forward(x_lnd, params, n_head, attn_mask=None):
    L, N, D = x_lnd.shape
    hd = D // n_head
    scale = 1.0 / float(hd) ** 0.5
    x = jnp.transpose(x_lnd, (1, 0, 2)).astype(jnp.float32)   # (N, L, D)

    def ln(z, w, b):
        mu = jnp.mean(z, -1, keepdims=True)
        var = jnp.mean((z - mu) ** 2, -1, keepdims=True)
        return (z - mu) / jnp.sqrt(var + 1e-5) * w + b

    xn = ln(x, params["ln1_w"], params["ln1_b"])
    q = xn @ params["wq"].T + params["bq"]
    k = xn @ params["wk"].T + params["bk"]
    v = xn @ params["wv"].T + params["bv"]
    q = q.reshape(N, L, n_head, hd).transpose(0, 2, 1, 3)
    k = k.reshape(N, L, n_head, hd).transpose(0, 2, 1, 3)
    v = v.reshape(N, L, n_head, hd).transpose(0, 2, 1, 3)
    s = jnp.einsum("nhqd,nhkd->nhqk", q, k) * scale
    if attn_mask is not None:
        s = s + attn_mask.astype(jnp.float32)
    p = jax.nn.softmax(s, axis=-1)
    a = jnp.einsum("nhqk,nhkd->nhqd", p, v).transpose(0, 2, 1, 3).reshape(N, L, D)
    a = a @ params["wo"].T + params["bo"]
    x1 = x + a
    xn2 = ln(x1, params["ln2_w"], params["ln2_b"])
    h = xn2 @ params["wfc"].T + params["bfc"]
    h = h * jax.nn.sigmoid(1.702 * h)
    y = h @ params["wpr"].T + params["bpr"]
    return jnp.transpose(x1 + y, (1, 0, 2))


if __name__ == "__main__":
    key = jax.random.PRNGKey(0)
    D, H = 32, 4
    kx, kp = jax.random.split(key)
    params = init_params(kp, D, H)

    # --- case 1: visual-style layer (no mask), even L ---
    L, N = 8, 2
    x = jax.random.normal(kx, (L, N, D), jnp.float32)
    out, ctx = self_attention_forward(x, params, H,
                                      compound_prompt_nctx=2, text_layer=False)
    out = jax.block_until_ready(out)
    ctx = jax.block_until_ready(ctx)
    ref = _reference_forward(x, params, H)
    np.testing.assert_allclose(np.asarray(out), np.asarray(ref), rtol=2e-2, atol=2e-2)
    assert out.shape == (L, N, D) and ctx.shape == (2, N, D)

    # --- case 2: text-style layer with causal mask and odd L (exercises padding) ---
    L2, N2 = 7, 3
    x2 = jax.random.normal(jax.random.fold_in(key, 7), (L2, N2, D), jnp.float32)
    causal = jnp.where(jnp.triu(jnp.ones((L2, L2), bool), k=1),
                       -jnp.inf, 0.0).astype(jnp.float32)
    out2, ctx2 = self_attention_forward(x2, params, H, attn_mask=causal,
                                        compound_prompt_nctx=2, text_layer=True)
    out2 = jax.block_until_ready(out2)
    ctx2 = jax.block_until_ready(ctx2)
    ref2 = _reference_forward(x2, params, H, attn_mask=causal)
    np.testing.assert_allclose(np.asarray(out2), np.asarray(ref2), rtol=2e-2, atol=2e-2)
    assert out2.shape == (L2, N2, D) and ctx2.shape == (2, N2, D)

    print("KERNEL_OK")
</pallas_src>

<mosaic_0001>
module attributes {stable_mosaic.version = 11 : i64} {
  func.func @_self_attn_block_kernel(%arg0: i32, %arg1: memref<8x32xbf16, #tpu.memory_space<vmem>>, %arg2: memref<8x8xf32, #tpu.memory_space<vmem>>, %arg3: memref<1x32xf32, #tpu.memory_space<vmem>>, %arg4: memref<1x32xf32, #tpu.memory_space<vmem>>, %arg5: memref<32x96xbf16, #tpu.memory_space<vmem>>, %arg6: memref<1x96xf32, #tpu.memory_space<vmem>>, %arg7: memref<32x32xbf16, #tpu.memory_space<vmem>>, %arg8: memref<1x32xf32, #tpu.memory_space<vmem>>, %arg9: memref<1x32xf32, #tpu.memory_space<vmem>>, %arg10: memref<1x32xf32, #tpu.memory_space<vmem>>, %arg11: memref<32x128xbf16, #tpu.memory_space<vmem>>, %arg12: memref<1x128xf32, #tpu.memory_space<vmem>>, %arg13: memref<128x32xbf16, #tpu.memory_space<vmem>>, %arg14: memref<1x32xf32, #tpu.memory_space<vmem>>, %arg15: memref<8x32xbf16, #tpu.memory_space<vmem>>, %arg16: memref<8x32xbf16, #tpu.memory_space<vmem>>) attributes {dimension_semantics = [#tpu.dimension_semantics<parallel>], iteration_bounds = array<i64: 2>, scalar_prefetch = 0 : i64, scratch_operands = 1 : i64, tpu.core_type = #tpu.core_type<tc>, window_params = [{transform_indices = @transform_0, window_bounds = array<i64: 8, 32>}, {pipeline_mode = #tpu.pipeline_mode<synchronous>, transform_indices = @transform_1, window_bounds = array<i64: 8, 8>}, {pipeline_mode = #tpu.pipeline_mode<synchronous>, transform_indices = @transform_2, window_bounds = array<i64: 1, 32>}, {pipeline_mode = #tpu.pipeline_mode<synchronous>, transform_indices = @transform_3, window_bounds = array<i64: 1, 32>}, {pipeline_mode = #tpu.pipeline_mode<synchronous>, transform_indices = @transform_4, window_bounds = array<i64: 32, 96>}, {pipeline_mode = #tpu.pipeline_mode<synchronous>, transform_indices = @transform_5, window_bounds = array<i64: 1, 96>}, {pipeline_mode = #tpu.pipeline_mode<synchronous>, transform_indices = @transform_6, window_bounds = array<i64: 32, 32>}, {pipeline_mode = #tpu.pipeline_mode<synchronous>, transform_indices = @transform_7, window_bounds = array<i64: 1, 32>}, {pipeline_mode = #tpu.pipeline_mode<synchronous>, transform_indices = @transform_8, window_bounds = array<i64: 1, 32>}, {pipeline_mode = #tpu.pipeline_mode<synchronous>, transform_indices = @transform_9, window_bounds = array<i64: 1, 32>}, {pipeline_mode = #tpu.pipeline_mode<synchronous>, transform_indices = @transform_10, window_bounds = array<i64: 32, 128>}, {pipeline_mode = #tpu.pipeline_mode<synchronous>, transform_indices = @transform_11, window_bounds = array<i64: 1, 128>}, {pipeline_mode = #tpu.pipeline_mode<synchronous>, transform_indices = @transform_12, window_bounds = array<i64: 128, 32>}, {pipeline_mode = #tpu.pipeline_mode<synchronous>, transform_indices = @transform_13, window_bounds = array<i64: 1, 32>}, {transform_indices = @transform_14, window_bounds = array<i64: 8, 32>}]} {
    %c0 = arith.constant 0 : index
    %c0_0 = arith.constant 0 : index
    %0 = vector.load %arg1[%c0, %c0_0] : memref<8x32xbf16, #tpu.memory_space<vmem>>, vector<8x32xbf16>
    %1 = arith.extf %0 : vector<8x32xbf16> to vector<8x32xf32>
    %c0_1 = arith.constant 0 : index
    %c0_2 = arith.constant 0 : index
    %2 = vector.load %arg3[%c0_1, %c0_2] : memref<1x32xf32, #tpu.memory_space<vmem>>, vector<1x32xf32>
    %c0_3 = arith.constant 0 : index
    %c0_4 = arith.constant 0 : index
    %3 = vector.load %arg4[%c0_3, %c0_4] : memref<1x32xf32, #tpu.memory_space<vmem>>, vector<1x32xf32>
    %cst = arith.constant dense<0.000000e+00> : vector<8xf32>
    %4 = vector.multi_reduction <add>, %1, %cst [1] : vector<8x32xf32> to vector<8xf32>
    %5 = vector.shape_cast %4 : vector<8xf32> to vector<8x1xf32>
    %cst_5 = arith.constant 3.200000e+01 : f32
    %6 = vector.broadcast %cst_5 : f32 to vector<8x1xf32>
    %7 = arith.divf %5, %6 : vector<8x1xf32>
    %8 = vector.broadcast %7 : vector<8x1xf32> to vector<8x32xf32>
    %9 = arith.subf %1, %8 : vector<8x32xf32>
    %10 = arith.mulf %9, %9 : vector<8x32xf32>
    %cst_6 = arith.constant dense<0.000000e+00> : vector<8xf32>
    %11 = vector.multi_reduction <add>, %10, %cst_6 [1] : vector<8x32xf32> to vector<8xf32>
    %12 = vector.shape_cast %11 : vector<8xf32> to vector<8x1xf32>
    %cst_7 = arith.constant 3.200000e+01 : f32
    %13 = vector.broadcast %cst_7 : f32 to vector<8x1xf32>
    %14 = arith.divf %12, %13 : vector<8x1xf32>
    %15 = vector.broadcast %7 : vector<8x1xf32> to vector<8x32xf32>
    %16 = arith.subf %1, %15 : vector<8x32xf32>
    %cst_8 = arith.constant 9.99999974E-6 : f32
    %17 = vector.broadcast %cst_8 : f32 to vector<8x1xf32>
    %18 = arith.addf %14, %17 : vector<8x1xf32>
    %19 = math.rsqrt %18 : vector<8x1xf32>
    %20 = vector.broadcast %19 : vector<8x1xf32> to vector<8x32xf32>
    %21 = arith.mulf %16, %20 : vector<8x32xf32>
    %22 = vector.broadcast %2 : vector<1x32xf32> to vector<8x32xf32>
    %23 = arith.mulf %21, %22 : vector<8x32xf32>
    %24 = vector.broadcast %3 : vector<1x32xf32> to vector<8x32xf32>
    %25 = arith.addf %23, %24 : vector<8x32xf32>
    %26 = arith.truncf %25 : vector<8x32xf32> to vector<8x32xbf16>
    %c0_9 = arith.constant 0 : index
    %c0_10 = arith.constant 0 : index
    %27 = vector.load %arg5[%c0_9, %c0_10] : memref<32x96xbf16, #tpu.memory_space<vmem>>, vector<32x96xbf16>
    %cst_11 = arith.constant dense<0.000000e+00> : vector<8x96xf32>
    %28 = tpu.matmul %26, %27, %cst_11 {dimension_numbers = #tpu.dot_dimension_numbers<[1], [0], [0], [1], [0, 0, 1, 1], [], []>} : vector<8x32xbf16>, vector<32x96xbf16>, vector<8x96xf32> -> vector<8x96xf32>
    %c0_12 = arith.constant 0 : index
    %c0_13 = arith.constant 0 : index
    %29 = vector.load %arg6[%c0_12, %c0_13] : memref<1x96xf32, #tpu.memory_space<vmem>>, vector<1x96xf32>
    %30 = vector.broadcast %29 : vector<1x96xf32> to vector<8x96xf32>
    %31 = arith.addf %28, %30 : vector<8x96xf32>
    %32 = arith.truncf %31 : vector<8x96xf32> to vector<8x96xbf16>
    %c0_14 = arith.constant 0 : index
    %c0_15 = arith.constant 0 : index
    %33 = vector.load %arg2[%c0_14, %c0_15] : memref<8x8xf32, #tpu.memory_space<vmem>>, vector<8x8xf32>
    %34 = vector.extract_strided_slice %32 {offsets = [0, 0], sizes = [8, 8], strides = [1, 1]} : vector<8x96xbf16> to vector<8x8xbf16>
    %35 = vector.shape_cast %34 : vector<8x8xbf16> to vector<1x8x8xbf16>
    %36 = vector.extract_strided_slice %32 {offsets = [0, 32], sizes = [8, 8], strides = [1, 1]} : vector<8x96xbf16> to vector<8x8xbf16>
    %37 = vector.shape_cast %36 : vector<8x8xbf16> to vector<1x8x8xbf16>
    %38 = vector.extract_strided_slice %32 {offsets = [0, 64], sizes = [8, 8], strides = [1, 1]} : vector<8x96xbf16> to vector<8x8xbf16>
    %39 = vector.shape_cast %38 : vector<8x8xbf16> to vector<1x8x8xbf16>
    "tpu.trace_start"() <{level = 10 : i32, message = "bqd,bkd->bqk"}> : () -> ()
    %cst_16 = arith.constant dense<0.000000e+00> : vector<1x8x8xf32>
    %40 = tpu.matmul %35, %37, %cst_16 {dimension_numbers = #tpu.dot_dimension_numbers<[2], [2], [1], [1], [0, 0, 0, 1, 1, 1], [0], [0]>} : vector<1x8x8xbf16>, vector<1x8x8xbf16>, vector<1x8x8xf32> -> vector<1x8x8xf32>
    "tpu.trace_stop"() : () -> ()
    %41 = vector.shape_cast %33 : vector<8x8xf32> to vector<1x8x8xf32>
    %42 = arith.addf %40, %41 : vector<1x8x8xf32>
    %cst_17 = arith.constant dense<0xFF800000> : vector<1x8xf32>
    %43 = vector.multi_reduction <maximumf>, %42, %cst_17 [2] : vector<1x8x8xf32> to vector<1x8xf32>
    %44 = vector.shape_cast %43 : vector<1x8xf32> to vector<1x8x1xf32>
    %45 = vector.broadcast %44 : vector<1x8x1xf32> to vector<1x8x8xf32>
    %46 = arith.subf %42, %45 : vector<1x8x8xf32>
    %47 = math.exp %46 : vector<1x8x8xf32>
    %cst_18 = arith.constant dense<0.000000e+00> : vector<1x8xf32>
    %48 = vector.multi_reduction <add>, %47, %cst_18 [2] : vector<1x8x8xf32> to vector<1x8xf32>
    %49 = vector.shape_cast %48 : vector<1x8xf32> to vector<1x8x1xf32>
    %50 = tpu.reciprocal %49 {approx = true} : vector<1x8x1xf32> -> vector<1x8x1xf32>
    %51 = arith.truncf %47 : vector<1x8x8xf32> to vector<1x8x8xbf16>
    "tpu.trace_start"() <{level = 10 : i32, message = "bqk,bkd->bqd"}> : () -> ()
    %cst_19 = arith.constant dense<0.000000e+00> : vector<1x8x8xf32>
    %52 = tpu.matmul %51, %39, %cst_19 {dimension_numbers = #tpu.dot_dimension_numbers<[2], [1], [1], [2], [0, 0, 0, 1, 1, 2], [0], [0]>} : vector<1x8x8xbf16>, vector<1x8x8xbf16>, vector<1x8x8xf32> -> vector<1x8x8xf32>
    "tpu.trace_stop"() : () -> ()
    %53 = vector.broadcast %50 : vector<1x8x1xf32> to vector<1x8x8xf32>
    %54 = arith.mulf %52, %53 : vector<1x8x8xf32>
    %55 = vector.shape_cast %54 : vector<1x8x8xf32> to vector<8x8xf32>
    %56 = arith.truncf %55 : vector<8x8xf32> to vector<8x8xbf16>
    %c0_20 = arith.constant 0 : index
    %c0_21 = arith.constant 0 : index
    %57 = vector.load %arg16[%c0_20, %c0_21] : memref<8x32xbf16, #tpu.memory_space<vmem>>, vector<8x8xbf16>
    tpu.vector_store %arg16[%c0_20, %c0_21], %56 {strides = array<i32>} : memref<8x32xbf16, #tpu.memory_space<vmem>>, vector<8x8xbf16>,
    %58 = vector.extract_strided_slice %32 {offsets = [0, 8], sizes = [8, 8], strides = [1, 1]} : vector<8x96xbf16> to vector<8x8xbf16>
    %59 = vector.shape_cast %58 : vector<8x8xbf16> to vector<1x8x8xbf16>
    %60 = vector.extract_strided_slice %32 {offsets = [0, 40], sizes = [8, 8], strides = [1, 1]} : vector<8x96xbf16> to vector<8x8xbf16>
    %61 = vector.shape_cast %60 : vector<8x8xbf16> to vector<1x8x8xbf16>
    %62 = vector.extract_strided_slice %32 {offsets = [0, 72], sizes = [8, 8], strides = [1, 1]} : vector<8x96xbf16> to vector<8x8xbf16>
    %63 = vector.shape_cast %62 : vector<8x8xbf16> to vector<1x8x8xbf16>
    "tpu.trace_start"() <{level = 10 : i32, message = "bqd,bkd->bqk"}> : () -> ()
    %cst_22 = arith.constant dense<0.000000e+00> : vector<1x8x8xf32>
    %64 = tpu.matmul %59, %61, %cst_22 {dimension_numbers = #tpu.dot_dimension_numbers<[2], [2], [1], [1], [0, 0, 0, 1, 1, 1], [0], [0]>} : vector<1x8x8xbf16>, vector<1x8x8xbf16>, vector<1x8x8xf32> -> vector<1x8x8xf32>
    "tpu.trace_stop"() : () -> ()
    %65 = vector.shape_cast %33 : vector<8x8xf32> to vector<1x8x8xf32>
    %66 = arith.addf %64, %65 : vector<1x8x8xf32>
    %cst_23 = arith.constant dense<0xFF800000> : vector<1x8xf32>
    %67 = vector.multi_reduction <maximumf>, %66, %cst_23 [2] : vector<1x8x8xf32> to vector<1x8xf32>
    %68 = vector.shape_cast %67 : vector<1x8xf32> to vector<1x8x1xf32>
    %69 = vector.broadcast %68 : vector<1x8x1xf32> to vector<1x8x8xf32>
    %70 = arith.subf %66, %69 : vector<1x8x8xf32>
    %71 = math.exp %70 : vector<1x8x8xf32>
    %cst_24 = arith.constant dense<0.000000e+00> : vector<1x8xf32>
    %72 = vector.multi_reduction <add>, %71, %cst_24 [2] : vector<1x8x8xf32> to vector<1x8xf32>
    %73 = vector.shape_cast %72 : vector<1x8xf32> to vector<1x8x1xf32>
    %74 = tpu.reciprocal %73 {approx = true} : vector<1x8x1xf32> -> vector<1x8x1xf32>
    %75 = arith.truncf %71 : vector<1x8x8xf32> to vector<1x8x8xbf16>
    "tpu.trace_start"() <{level = 10 : i32, message = "bqk,bkd->bqd"}> : () -> ()
    %cst_25 = arith.constant dense<0.000000e+00> : vector<1x8x8xf32>
    %76 = tpu.matmul %75, %63, %cst_25 {dimension_numbers = #tpu.dot_dimension_numbers<[2], [1], [1], [2], [0, 0, 0, 1, 1, 2], [0], [0]>} : vector<1x8x8xbf16>, vector<1x8x8xbf16>, vector<1x8x8xf32> -> vector<1x8x8xf32>
    "tpu.trace_stop"() : () -> ()
    %77 = vector.broadcast %74 : vector<1x8x1xf32> to vector<1x8x8xf32>
    %78 = arith.mulf %76, %77 : vector<1x8x8xf32>
    %79 = vector.shape_cast %78 : vector<1x8x8xf32> to vector<8x8xf32>
    %80 = arith.truncf %79 : vector<8x8xf32> to vector<8x8xbf16>
    %c0_26 = arith.constant 0 : index
    %c8 = arith.constant 8 : index
    %81 = vector.load %arg16[%c0_26, %c8] : memref<8x32xbf16, #tpu.memory_space<vmem>>, vector<8x8xbf16>
    tpu.vector_store %arg16[%c0_26, %c8], %80 {strides = array<i32>} : memref<8x32xbf16, #tpu.memory_space<vmem>>, vector<8x8xbf16>,
    %82 = vector.extract_strided_slice %32 {offsets = [0, 16], sizes = [8, 8], strides = [1, 1]} : vector<8x96xbf16> to vector<8x8xbf16>
    %83 = vector.shape_cast %82 : vector<8x8xbf16> to vector<1x8x8xbf16>
    %84 = vector.extract_strided_slice %32 {offsets = [0, 48], sizes = [8, 8], strides = [1, 1]} : vector<8x96xbf16> to vector<8x8xbf16>
    %85 = vector.shape_cast %84 : vector<8x8xbf16> to vector<1x8x8xbf16>
    %86 = vector.extract_strided_slice %32 {offsets = [0, 80], sizes = [8, 8], strides = [1, 1]} : vector<8x96xbf16> to vector<8x8xbf16>
    %87 = vector.shape_cast %86 : vector<8x8xbf16> to vector<1x8x8xbf16>
    "tpu.trace_start"() <{level = 10 : i32, message = "bqd,bkd->bqk"}> : () -> ()
    %cst_27 = arith.constant dense<0.000000e+00> : vector<1x8x8xf32>
    %88 = tpu.matmul %83, %85, %cst_27 {dimension_numbers = #tpu.dot_dimension_numbers<[2], [2], [1], [1], [0, 0, 0, 1, 1, 1], [0], [0]>} : vector<1x8x8xbf16>, vector<1x8x8xbf16>, vector<1x8x8xf32> -> vector<1x8x8xf32>
    "tpu.trace_stop"() : () -> ()
    %89 = vector.shape_cast %33 : vector<8x8xf32> to vector<1x8x8xf32>
    %90 = arith.addf %88, %89 : vector<1x8x8xf32>
    %cst_28 = arith.constant dense<0xFF800000> : vector<1x8xf32>
    %91 = vector.multi_reduction <maximumf>, %90, %cst_28 [2] : vector<1x8x8xf32> to vector<1x8xf32>
    %92 = vector.shape_cast %91 : vector<1x8xf32> to vector<1x8x1xf32>
    %93 = vector.broadcast %92 : vector<1x8x1xf32> to vector<1x8x8xf32>
    %94 = arith.subf %90, %93 : vector<1x8x8xf32>
    %95 = math.exp %94 : vector<1x8x8xf32>
    %cst_29 = arith.constant dense<0.000000e+00> : vector<1x8xf32>
    %96 = vector.multi_reduction <add>, %95, %cst_29 [2] : vector<1x8x8xf32> to vector<1x8xf32>
    %97 = vector.shape_cast %96 : vector<1x8xf32> to vector<1x8x1xf32>
    %98 = tpu.reciprocal %97 {approx = true} : vector<1x8x1xf32> -> vector<1x8x1xf32>
    %99 = arith.truncf %95 : vector<1x8x8xf32> to vector<1x8x8xbf16>
    "tpu.trace_start"() <{level = 10 : i32, message = "bqk,bkd->bqd"}> : () -> ()
    %cst_30 = arith.constant dense<0.000000e+00> : vector<1x8x8xf32>
    %100 = tpu.matmul %99, %87, %cst_30 {dimension_numbers = #tpu.dot_dimension_numbers<[2], [1], [1], [2], [0, 0, 0, 1, 1, 2], [0], [0]>} : vector<1x8x8xbf16>, vector<1x8x8xbf16>, vector<1x8x8xf32> -> vector<1x8x8xf32>
    "tpu.trace_stop"() : () -> ()
    %101 = vector.broadcast %98 : vector<1x8x1xf32> to vector<1x8x8xf32>
    %102 = arith.mulf %100, %101 : vector<1x8x8xf32>
    %103 = vector.shape_cast %102 : vector<1x8x8xf32> to vector<8x8xf32>
    %104 = arith.truncf %103 : vector<8x8xf32> to vector<8x8xbf16>
    %c0_31 = arith.constant 0 : index
    %c16 = arith.constant 16 : index
    %105 = vector.load %arg16[%c0_31, %c16] : memref<8x32xbf16, #tpu.memory_space<vmem>>, vector<8x8xbf16>
    tpu.vector_store %arg16[%c0_31, %c16], %104 {strides = array<i32>} : memref<8x32xbf16, #tpu.memory_space<vmem>>, vector<8x8xbf16>,
    %106 = vector.extract_strided_slice %32 {offsets = [0, 24], sizes = [8, 8], strides = [1, 1]} : vector<8x96xbf16> to vector<8x8xbf16>
    %107 = vector.shape_cast %106 : vector<8x8xbf16> to vector<1x8x8xbf16>
    %108 = vector.extract_strided_slice %32 {offsets = [0, 56], sizes = [8, 8], strides = [1, 1]} : vector<8x96xbf16> to vector<8x8xbf16>
    %109 = vector.shape_cast %108 : vector<8x8xbf16> to vector<1x8x8xbf16>
    %110 = vector.extract_strided_slice %32 {offsets = [0, 88], sizes = [8, 8], strides = [1, 1]} : vector<8x96xbf16> to vector<8x8xbf16>
    %111 = vector.shape_cast %110 : vector<8x8xbf16> to vector<1x8x8xbf16>
    "tpu.trace_start"() <{level = 10 : i32, message = "bqd,bkd->bqk"}> : () -> ()
    %cst_32 = arith.constant dense<0.000000e+00> : vector<1x8x8xf32>
    %112 = tpu.matmul %107, %109, %cst_32 {dimension_numbers = #tpu.dot_dimension_numbers<[2], [2], [1], [1], [0, 0, 0, 1, 1, 1], [0], [0]>} : vector<1x8x8xbf16>, vector<1x8x8xbf16>, vector<1x8x8xf32> -> vector<1x8x8xf32>
    "tpu.trace_stop"() : () -> ()
    %113 = vector.shape_cast %33 : vector<8x8xf32> to vector<1x8x8xf32>
    %114 = arith.addf %112, %113 : vector<1x8x8xf32>
    %cst_33 = arith.constant dense<0xFF800000> : vector<1x8xf32>
    %115 = vector.multi_reduction <maximumf>, %114, %cst_33 [2] : vector<1x8x8xf32> to vector<1x8xf32>
    %116 = vector.shape_cast %115 : vector<1x8xf32> to vector<1x8x1xf32>
    %117 = vector.broadcast %116 : vector<1x8x1xf32> to vector<1x8x8xf32>
    %118 = arith.subf %114, %117 : vector<1x8x8xf32>
    %119 = math.exp %118 : vector<1x8x8xf32>
    %cst_34 = arith.constant dense<0.000000e+00> : vector<1x8xf32>
    %120 = vector.multi_reduction <add>, %119, %cst_34 [2] : vector<1x8x8xf32> to vector<1x8xf32>
    %121 = vector.shape_cast %120 : vector<1x8xf32> to vector<1x8x1xf32>
    %122 = tpu.reciprocal %121 {approx = true} : vector<1x8x1xf32> -> vector<1x8x1xf32>
    %123 = arith.truncf %119 : vector<1x8x8xf32> to vector<1x8x8xbf16>
    "tpu.trace_start"() <{level = 10 : i32, message = "bqk,bkd->bqd"}> : () -> ()
    %cst_35 = arith.constant dense<0.000000e+00> : vector<1x8x8xf32>
    %124 = tpu.matmul %123, %111, %cst_35 {dimension_numbers = #tpu.dot_dimension_numbers<[2], [1], [1], [2], [0, 0, 0, 1, 1, 2], [0], [0]>} : vector<1x8x8xbf16>, vector<1x8x8xbf16>, vector<1x8x8xf32> -> vector<1x8x8xf32>
    "tpu.trace_stop"() : () -> ()
    %125 = vector.broadcast %122 : vector<1x8x1xf32> to vector<1x8x8xf32>
    %126 = arith.mulf %124, %125 : vector<1x8x8xf32>
    %127 = vector.shape_cast %126 : vector<1x8x8xf32> to vector<8x8xf32>
    %128 = arith.truncf %127 : vector<8x8xf32> to vector<8x8xbf16>
    %c0_36 = arith.constant 0 : index
    %c24 = arith.constant 24 : index
    %129 = vector.load %arg16[%c0_36, %c24] : memref<8x32xbf16, #tpu.memory_space<vmem>>, vector<8x8xbf16>
    tpu.vector_store %arg16[%c0_36, %c24], %128 {strides = array<i32>} : memref<8x32xbf16, #tpu.memory_space<vmem>>, vector<8x8xbf16>,
    %c0_37 = arith.constant 0 : index
    %c0_38 = arith.constant 0 : index
    %130 = vector.load %arg16[%c0_37, %c0_38] : memref<8x32xbf16, #tpu.memory_space<vmem>>, vector<8x32xbf16>
    %c0_39 = arith.constant 0 : index
    %c0_40 = arith.constant 0 : index
    %131 = vector.load %arg7[%c0_39, %c0_40] : memref<32x32xbf16, #tpu.memory_space<vmem>>, vector<32x32xbf16>
    %cst_41 = arith.constant dense<0.000000e+00> : vector<8x32xf32>
    %132 = tpu.matmul %130, %131, %cst_41 {dimension_numbers = #tpu.dot_dimension_numbers<[1], [0], [0], [1], [0, 0, 1, 1], [], []>} : vector<8x32xbf16>, vector<32x32xbf16>, vector<8x32xf32> -> vector<8x32xf32>
    %c0_42 = arith.constant 0 : index
    %c0_43 = arith.constant 0 : index
    %133 = vector.load %arg8[%c0_42, %c0_43] : memref<1x32xf32, #tpu.memory_space<vmem>>, vector<1x32xf32>
    %134 = vector.broadcast %133 : vector<1x32xf32> to vector<8x32xf32>
    %135 = arith.addf %132, %134 : vector<8x32xf32>
    %136 = arith.addf %1, %135 : vector<8x32xf32>
    %c0_44 = arith.constant 0 : index
    %c0_45 = arith.constant 0 : index
    %137 = vector.load %arg9[%c0_44, %c0_45] : memref<1x32xf32, #tpu.memory_space<vmem>>, vector<1x32xf32>
    %c0_46 = arith.constant 0 : index
    %c0_47 = arith.constant 0 : index
    %138 = vector.load %arg10[%c0_46, %c0_47] : memref<1x32xf32, #tpu.memory_space<vmem>>, vector<1x32xf32>
    %cst_48 = arith.constant dense<0.000000e+00> : vector<8xf32>
    %139 = vector.multi_reduction <add>, %136, %cst_48 [1] : vector<8x32xf32> to vector<8xf32>
    %140 = vector.shape_cast %139 : vector<8xf32> to vector<8x1xf32>
    %cst_49 = arith.constant 3.200000e+01 : f32
    %141 = vector.broadcast %cst_49 : f32 to vector<8x1xf32>
    %142 = arith.divf %140, %141 : vector<8x1xf32>
    %143 = vector.broadcast %142 : vector<8x1xf32> to vector<8x32xf32>
    %144 = arith.subf %136, %143 : vector<8x32xf32>
    %145 = arith.mulf %144, %144 : vector<8x32xf32>
    %cst_50 = arith.constant dense<0.000000e+00> : vector<8xf32>
    %146 = vector.multi_reduction <add>, %145, %cst_50 [1] : vector<8x32xf32> to vector<8xf32>
    %147 = vector.shape_cast %146 : vector<8xf32> to vector<8x1xf32>
    %cst_51 = arith.constant 3.200000e+01 : f32
    %148 = vector.broadcast %cst_51 : f32 to vector<8x1xf32>
    %149 = arith.divf %147, %148 : vector<8x1xf32>
    %150 = vector.broadcast %142 : vector<8x1xf32> to vector<8x32xf32>
    %151 = arith.subf %136, %150 : vector<8x32xf32>
    %cst_52 = arith.constant 9.99999974E-6 : f32
    %152 = vector.broadcast %cst_52 : f32 to vector<8x1xf32>
    %153 = arith.addf %149, %152 : vector<8x1xf32>
    %154 = math.rsqrt %153 : vector<8x1xf32>
    %155 = vector.broadcast %154 : vector<8x1xf32> to vector<8x32xf32>
    %156 = arith.mulf %151, %155 : vector<8x32xf32>
    %157 = vector.broadcast %137 : vector<1x32xf32> to vector<8x32xf32>
    %158 = arith.mulf %156, %157 : vector<8x32xf32>
    %159 = vector.broadcast %138 : vector<1x32xf32> to vector<8x32xf32>
    %160 = arith.addf %158, %159 : vector<8x32xf32>
    %161 = arith.truncf %160 : vector<8x32xf32> to vector<8x32xbf16>
    %c0_53 = arith.constant 0 : index
    %c0_54 = arith.constant 0 : index
    %162 = vector.load %arg14[%c0_53, %c0_54] : memref<1x32xf32, #tpu.memory_space<vmem>>, vector<1x32xf32>
    %163 = vector.broadcast %162 : vector<1x32xf32> to vector<8x32xf32>
    %164 = arith.addf %136, %163 : vector<8x32xf32>
    %c0_55 = arith.constant 0 : index
    %c0_56 = arith.constant 0 : index
    %165 = vector.load %arg11[%c0_55, %c0_56] : memref<32x128xbf16, #tpu.memory_space<vmem>>, vector<32x128xbf16>
    %cst_57 = arith.constant dense<0.000000e+00> : vector<8x128xf32>
    %166 = tpu.matmul %161, %165, %cst_57 {dimension_numbers = #tpu.dot_dimension_numbers<[1], [0], [0], [1], [0, 0, 1, 1], [], []>} : vector<8x32xbf16>, vector<32x128xbf16>, vector<8x128xf32> -> vector<8x128xf32>
    %c0_58 = arith.constant 0 : index
    %c0_59 = arith.constant 0 : index
    %167 = vector.load %arg12[%c0_58, %c0_59] : memref<1x128xf32, #tpu.memory_space<vmem>>, vector<1x128xf32>
    %168 = vector.broadcast %167 : vector<1x128xf32> to vector<8x128xf32>
    %169 = arith.addf %166, %168 : vector<8x128xf32>
    %cst_60 = arith.constant 1.702000e+00 : f32
    %170 = vector.broadcast %cst_60 : f32 to vector<8x128xf32>
    %171 = arith.mulf %170, %169 : vector<8x128xf32>
    %172 = arith.negf %171 : vector<8x128xf32>
    %173 = math.exp %172 : vector<8x128xf32>
    %cst_61 = arith.constant 1.000000e+00 : f32
    %174 = vector.broadcast %cst_61 : f32 to vector<8x128xf32>
    %175 = arith.addf %174, %173 : vector<8x128xf32>
    %176 = arith.divf %174, %175 : vector<8x128xf32>
    %177 = arith.mulf %169, %176 : vector<8x128xf32>
    %178 = arith.truncf %177 : vector<8x128xf32> to vector<8x128xbf16>
    %c0_62 = arith.constant 0 : index
    %c0_63 = arith.constant 0 : index
    %179 = vector.load %arg13[%c0_62, %c0_63] : memref<128x32xbf16, #tpu.memory_space<vmem>>, vector<128x32xbf16>
    %cst_64 = arith.constant dense<0.000000e+00> : vector<8x32xf32>
    %180 = tpu.matmul %178, %179, %cst_64 {dimension_numbers = #tpu.dot_dimension_numbers<[1], [0], [0], [1], [0, 0, 1, 1], [], []>} : vector<8x128xbf16>, vector<128x32xbf16>, vector<8x32xf32> -> vector<8x32xf32>
    %181 = arith.addf %164, %180 : vector<8x32xf32>
    %182 = arith.truncf %181 : vector<8x32xf32> to vector<8x32xbf16>
    %c0_65 = arith.constant 0 : index
    %c0_66 = arith.constant 0 : index
    %183 = vector.load %arg15[%c0_65, %c0_66] : memref<8x32xbf16, #tpu.memory_space<vmem>>, vector<8x32xbf16>
    tpu.vector_store %arg15[%c0_65, %c0_66], %182 {strides = array<i32>} : memref<8x32xbf16, #tpu.memory_space<vmem>>, vector<8x32xbf16>,
    return
  }
  func.func @transform_0(%arg0: i32) -> (i32, i32) {
    %c0_i32 = arith.constant 0 : i32
    %c0_i32_0 = arith.constant 0 : i32
    return %arg0, %c0_i32 : i32, i32
  }
  func.func @transform_1(%arg0: i32) -> (i32, i32) {
    %c0_i32 = arith.constant 0 : i32
    %c0_i32_0 = arith.constant 0 : i32
    %c0_i32_1 = arith.constant 0 : i32
    return %c0_i32, %c0_i32_0 : i32, i32
  }
  func.func @transform_2(%arg0: i32) -> (i32, i32) {
    %c0_i32 = arith.constant 0 : i32
    %c0_i32_0 = arith.constant 0 : i32
    %c0_i32_1 = arith.constant 0 : i32
    return %c0_i32, %c0_i32_0 : i32, i32
  }
  func.func @transform_3(%arg0: i32) -> (i32, i32) {
    %c0_i32 = arith.constant 0 : i32
    %c0_i32_0 = arith.constant 0 : i32
    %c0_i32_1 = arith.constant 0 : i32
    return %c0_i32, %c0_i32_0 : i32, i32
  }
  func.func @transform_4(%arg0: i32) -> (i32, i32) {
    %c0_i32 = arith.constant 0 : i32
    %c0_i32_0 = arith.constant 0 : i32
    %c0_i32_1 = arith.constant 0 : i32
    return %c0_i32, %c0_i32_0 : i32, i32
  }
  func.func @transform_5(%arg0: i32) -> (i32, i32) {
    %c0_i32 = arith.constant 0 : i32
    %c0_i32_0 = arith.constant 0 : i32
    %c0_i32_1 = arith.constant 0 : i32
    return %c0_i32, %c0_i32_0 : i32, i32
  }
  func.func @transform_6(%arg0: i32) -> (i32, i32) {
    %c0_i32 = arith.constant 0 : i32
    %c0_i32_0 = arith.constant 0 : i32
    %c0_i32_1 = arith.constant 0 : i32
    return %c0_i32, %c0_i32_0 : i32, i32
  }
  func.func @transform_7(%arg0: i32) -> (i32, i32) {
    %c0_i32 = arith.constant 0 : i32
    %c0_i32_0 = arith.constant 0 : i32
    %c0_i32_1 = arith.constant 0 : i32
    return %c0_i32, %c0_i32_0 : i32, i32
  }
  func.func @transform_8(%arg0: i32) -> (i32, i32) {
    %c0_i32 = arith.constant 0 : i32
    %c0_i32_0 = arith.constant 0 : i32
    %c0_i32_1 = arith.constant 0 : i32
    return %c0_i32, %c0_i32_0 : i32, i32
  }
  func.func @transform_9(%arg0: i32) -> (i32, i32) {
    %c0_i32 = arith.constant 0 : i32
    %c0_i32_0 = arith.constant 0 : i32
    %c0_i32_1 = arith.constant 0 : i32
    return %c0_i32, %c0_i32_0 : i32, i32
  }
  func.func @transform_10(%arg0: i32) -> (i32, i32) {
    %c0_i32 = arith.constant 0 : i32
    %c0_i32_0 = arith.constant 0 : i32
    %c0_i32_1 = arith.constant 0 : i32
    return %c0_i32, %c0_i32_0 : i32, i32
  }
  func.func @transform_11(%arg0: i32) -> (i32, i32) {
    %c0_i32 = arith.constant 0 : i32
    %c0_i32_0 = arith.constant 0 : i32
    %c0_i32_1 = arith.constant 0 : i32
    return %c0_i32, %c0_i32_0 : i32, i32
  }
  func.func @transform_12(%arg0: i32) -> (i32, i32) {
    %c0_i32 = arith.constant 0 : i32
    %c0_i32_0 = arith.constant 0 : i32
    %c0_i32_1 = arith.constant 0 : i32
    return %c0_i32, %c0_i32_0 : i32, i32
  }
  func.func @transform_13(%arg0: i32) -> (i32, i32) {
    %c0_i32 = arith.constant 0 : i32
    %c0_i32_0 = arith.constant 0 : i32
    %c0_i32_1 = arith.constant 0 : i32
    return %c0_i32, %c0_i32_0 : i32, i32
  }
  func.func @transform_14(%arg0: i32) -> (i32, i32) {
    %c0_i32 = arith.constant 0 : i32
    %c0_i32_0 = arith.constant 0 : i32
    return %arg0, %c0_i32 : i32, i32
  }
}

</mosaic_0001>

<bundles_post_ra>
// kernel: tpu_custom_call.1
= control target key start
LH: loop header
LB: loop body
LE: loop exit
PB: predicated region body
PF: predicated region fallthrough
CT: control target
= control target key end

     0   :  { %s2094_s0 = inlined_call_operand.vmem [shape: bf16[16,32], index: 0, kind: input, shape index: {}]   ;;  %s2095_s1 = inlined_call_operand.vmem [shape: f32[8,8], index: 1, kind: input, shape index: {}]   ;;  %s2096_s2 = inlined_call_operand.vmem [shape: f32[1,32], index: 2, kind: input, shape index: {}]   ;;  %s2097_s3 = inlined_call_operand.vmem [shape: f32[1,32], index: 3, kind: input, shape index: {}]   ;;  %s2098_s4 = inlined_call_operand.vmem [shape: bf16[32,96], index: 4, kind: input, shape index: {}]   ;;  %s2099_s5 = inlined_call_operand.vmem [shape: f32[1,96], index: 5, kind: input, shape index: {}]   ;;  %s2100_s6 = inlined_call_operand.vmem [shape: bf16[32,32], index: 6, kind: input, shape index: {}]   ;;  %s2101_s7 = inlined_call_operand.vmem [shape: f32[1,32], index: 7, kind: input, shape index: {}]   ;;  %s2102_s8 = inlined_call_operand.vmem [shape: f32[1,32], index: 8, kind: input, shape index: {}]   ;;  %s2103_s9 = inlined_call_operand.vmem [shape: f32[1,32], index: 9, kind: input, shape index: {}]   ;;  %s2104_s10 = inlined_call_operand.vmem [shape: bf16[32,128], index: 10, kind: input, shape index: {}]   ;;  %s2105_s11 = inlined_call_operand.vmem [shape: f32[1,128], index: 11, kind: input, shape index: {}]   ;;  %s2106_s12 = inlined_call_operand.vmem [shape: bf16[128,32], index: 12, kind: input, shape index: {}]   ;;  %s2107_s13 = inlined_call_operand.vmem [shape: f32[1,32], index: 13, kind: input, shape index: {}]   ;;  %s2108_s14 = inlined_call_operand.hbm [shape: bf16[16,32], index: 14, kind: output, shape index: {}]  }
   0x1   :  { %2109 = sst [smem:[#allocation6_spill]] %s2094_s0 }
   0x2   :  { %2110 = sst [smem:[#allocation7_spill]] %s2095_s1 }
   0x3   :  { %2111 = sst [smem:[#allocation8_spill]] %s2096_s2 }
   0x4   :  { %2112 = sst [smem:[#allocation9_spill]] %s2097_s3 }
   0x5   :  { %19 = vsyncpa [#allocation4], 0 }
   0x6   :  { %21 = vsyncpa [#allocation4 + $0x1], 0  ;;  %s1824_s29 = smov 0   ;;  %s1826_s30 = smov 0  }
   0x7   :  { %s1828_s15 = smov 0   ;;  %s1830_s16 = smov 0  }
   0x8 LB: > { %s1845_s17 = sadd.s32 4294967295, %s1730_s16   ;;  %s1399_s18 = sadd.s32 4294967294, %s1730_s16   ;;  %s1730_s16 = sphi %s1830_s16, %s2122_s16   ;;  %s1726_s15 = sphi %s1828_s15, %s2121_s15   ;;  %s1722_s30 = sphi %s1826_s30, %s2120_s30   ;;  %s1718_s29 = sphi %s1824_s29, %s2119_s29  }
   0x9   : > { %s1849_s19 = sadd.s32 1, %s1730_s16   ;;  %s333_s20 = sadd.s32 1, %s1726_s15 }
   0xa   : > { %s330_s21 = ssub.s32 %s1730_s16, %s1849_s19  ;;  %p343_p0 = scmp.ne.s32.totalorder %s1726_s15, %s1722_s30 }
   0xb   : > { %p331_p1 = scmp.eq.s32.totalorder %s330_s21, 0  ;;  %p344_p2 = scmp.eq.s32.totalorder %s1845_s17, 1 }
   0xc   : > { %p349_p3 = scmp.ne.s32.totalorder %s1722_s30, %s1718_s29  ;;  %p350_p4 = scmp.eq.s32.totalorder %s1399_s18, 1 }
   0xd   : > { %s1860_s22 = scalar_select %p331_p1, %s1726_s15, %s333_s20  }
   0xe   : > { %p1862_p5 = por %p344_p2, %p343_p0  ;;  %p1866_p6 = por %p350_p4, %p349_p3 }
   0xf   : > { %p1402_p7 = scmp.ge.s32.totalorder %s1730_s16, 1  ;;  %p414_p8 = scmp.lt.s32.totalorder %s1730_s16, 3 }
  0x11   : > { %p415_p9 = pnand %p1402_p7, %p414_p8 }
  0x12   : > { %p459_p10 = scmp.lt.s32.totalorder (!%p415_p9), %s1845_s17, 1  ;;  %vm468_vm0 = vcmask (!%p415_p9), 261120   ;;  %s2115_s0 = sld [smem:[#allocation6_spill]] (!%p415_p9)  ;;  %v1630_v8 = vld [vmem:[%s2098_s4] sm:$0xff] (!%p415_p9)   ;;  %v1732_v9 = vmov (!%p415_p9), 0.0   ;;  %vm1733_vm1 = vmmov (!%p415_p9), 0  }
  0x13   : > { %418 = sbr.rel (%p415_p9) target bundleno = 2468 (0x9a4), region = 76  ;;  %1483 = vmatprep.subr.bf16.mxu0 (!%p415_p9), %v1732_v9  ;;  %1487 = vmatprep.mubr.msk.bf16.mxu0 (!%p415_p9), %vm1733_vm1, %v1732_v9  ;;  %v1631_v10 = vld [vmem:[%s2098_s4 + $0x8] sm:$0xff] (!%p415_p9)   ;;  %s2116_s2 = sld [smem:[#allocation8_spill]] (!%p415_p9)  ;;  %v1407_v21 = vld [vmem:[%s2099_s5] ss:$0 sm:$0xff] (!%p415_p9)  ;;  %vm569_vm2 = vcmask (!%p415_p9), 64512  }
  0x14   : > { %1484 = vmatpush3.bf16.msra.mxu0 (!%p415_p9), %v1630_v8  ;;  %1503 = vmatprep.subr.bf16.mxu1 (!%p415_p9), %v1732_v9  ;;  %s2117_s3 = sld [smem:[#allocation9_spill]] (!%p415_p9)  ;;  %s1735_s27 = smov (!%p415_p9), 96   ;;  %vm632_vm3 = vcmask (!%p415_p9), 1043456   ;;  %vm678_vm4 = vcmask (!%p415_p9), 60416   ;;  %vm797_vm5 = vcmask (!%p415_p9), 126016   ;;  %vm916_vm6 = vcmask (!%p415_p9), 191616  }
  0x15   : > { %1485 = vmatprep.subr.bf16.mxu0 (!%p415_p9), %v1732_v9  ;;  %1505 = vmatprep.mubr.msk.bf16.mxu1 (!%p415_p9), %vm1733_vm1, %v1732_v9  ;;  %s1736_s28 = smov (!%p415_p9), 88   ;;  %s1738_s20 = smov (!%p415_p9), 112   ;;  %vm1035_vm7 = vcmask (!%p415_p9), 257216   ;;  %vm1324_vm8 = vcmask (!%p415_p9), 257024  }
  0x16   : > { %s1739_s21 = smov (!%p415_p9), 72   ;;  %s2118_s1 = sld [smem:[#allocation7_spill]] (!%p415_p9) }
  0x18   : > { %1486 = vmatpush3.bf16.msra.mxu0 (!%p415_p9), %v1631_v10 }
  0x19   : > { %1491 = vmatprep.subr.bf16.mxu0 (!%p415_p9), %v1732_v9  ;;  %v1405_v15 = vld [vmem:[%s2116_s2] ss:$0 sm:$0xff] (!%p415_p9) }
  0x1a   : > { %s460_s25 = scalar_select %p459_p10, %s1845_s17, 1  ;;  %v1406_v17 = vld [vmem:[%s2117_s3] ss:$0 sm:$0xff] }
  0x1c   : > { %s1404_s26 = sshll.u32 %s460_s25, 2  ;;  %s1740_s25 = smov 104   ;;  %v565_v39 = vld [vmem:[%s2118_s1] sm:$0xff] }
  0x1d   : > { %s462_s18 = scalar_lea.vmem %s2115_s0, %s1404_s26  ;;  %s1734_s26 = smov 120  }
  0x1e   : > { %v464_v0 = vld [vmem:[%s462_s18] sm:$0xf]  ;;  %s1737_s18 = smov 80  }
  0x1f   : > { %v1877_v1 = vunpack.c.l.bf16 %v464_v0 }
  0x21   : > { %v469_v2 = vsel %vm468_vm0, %v1877_v1, 0.0 }
  0x22   : > { %470 = vadd.xlane.f32.xlu0 %v469_v2 }
  0xaf   : > { %v471_v3 = vpop.xlane.xlu0 %470 }
  0xb0   : > { %v473_v4 = vmul.f32 0.03125, %v471_v3 }
  0xb2   : > { %v474_v5 = vsub.f32 %v1877_v1, %v473_v4 }
  0xb4   : > { %v475_v6 = vmul.f32 %v474_v5, %v474_v5 }
  0xb6   : > { %v476_v7 = vsel %vm468_vm0, %v475_v6, 0.0 }
  0xb7   : > { %477 = vadd.xlane.f32.xlu0 %v476_v7 }
 0x144   : > { %v478_v11 = vpop.xlane.xlu0 %477 }
 0x145   : > { %v479_v12 = vmul.f32 0.03125, %v478_v11 }
 0x147   : > { %v480_v13 = vadd.f32 1e-05, %v479_v12 }
 0x149   : > { %1644 = vrsqrt.f32 %v480_v13 }
 0x153   : > { %v1645_v14 = vpop.eup %1644 }
 0x154   : > { %v482_v16 = vmul.f32 %v1645_v14, %v474_v5 }
 0x156   : > { %v489_v18 = vmul.f32 %v1405_v15, %v482_v16 }
 0x158   : > { %v496_v19 = vadd.f32 %v1406_v17, %v489_v18 }
 0x15a   : > { %v497_v20 = vpack.c.bf16 %v496_v19, %v496_v19 }
 0x15c   : > { %1488 = vmatmul.mubr.msk.bf16.vlgmr.msra.gmra.mrb[0].mxu0 %vm468_vm0, %v497_v20 }
 0x15d   : > { %1493 = vmatprep.mubr.msk.bf16.mxu0 %vm1733_vm1, %v1732_v9 }
 0x22f   : > { %v558_v22 = vpop.f32.mrb[0].mxu0 }
 0x230   : > { %v559_v23 = vadd.f32 %v1407_v21, %v558_v22  ;;  %v1489_v24 = vpop.f32.mrb[1].mxu0 }
 0x231   : > { %v561_v25 = vpop.f32.mrb[2].mxu0 }
 0x232   : > { %v1909_v26 = vpack.c.bf16 %v559_v23, %v559_v23  ;;  %v1490_v27 = vpop.f32.mrb[3].mxu0 }
 0x234   : > { %680 = vrot.lane.b32.xlu0 %v1909_v26, %s1734_s26  ;;  %567 = vrot.lane.b32.xlu1 %v1909_v26, %s1735_s27  ;;  %s1443_s27 = sshll.u32 %s1845_s17, 6 }
 0x235   : > { %s2052_s2 = scalar_lea.hbm %s2108_s14, %s1443_s27 }
 0x238   : > { %682 = vrot.lane.b32.xlu1 %v1909_v26, %s1736_s28  ;;  %s1741_s28 = smov 64  }
 0x23c   : > { %801 = vrot.lane.b32.xlu1 %v1909_v26, %s1737_s18  ;;  %s1742_s18 = smov 56  }
 0x240   : > { %799 = vrot.lane.b32.xlu1 %v1909_v26, %s1738_s20  ;;  %s1743_s20 = smov 48  }
 0x244   : > { %920 = vrot.lane.b32.xlu1 %v1909_v26, %s1739_s21  ;;  %s1744_s21 = smov 40  }
 0x248   : > { %918 = vrot.lane.b32.xlu1 %v1909_v26, %s1740_s25  ;;  %s1745_s25 = smov 8  }
 0x2a6   : > { %v568_v28 = vpop.permute.xlu1 %567  ;;  %v681_v33 = vpop.permute.xlu0 %680 }
 0x2a7   : > { %v574_v29 = vsel %vm569_vm2, %v568_v28, 0 }
 0x2a8   : > { %1492 = vmatpush3.bf16.xpose.msra.mxu0 %v574_v29 }
 0x2a9   : > { %1497 = vmatprep.subr.bf16.mxu0 %v1732_v9 }
 0x2aa   : > { %v683_v30 = vpop.permute.xlu1 %682 }
 0x2ab   : > { %v688_v31 = vsel %vm569_vm2, %v683_v30, 0 }
 0x2ac   : > { %1504 = vmatpush3.bf16.xpose.msra.mxu1 %v688_v31 }
 0x2ad   : > { %1515 = vmatprep.subr.bf16.mxu1 %v1732_v9 }
 0x2ae   : > { %v802_v32 = vpop.permute.xlu1 %801 }
 0x2af   : > { %1494 = vmatmul.mubr.msk.bf16.vlgmr.msra.gmra.mrb[4].mxu0 %vm569_vm2, %v1909_v26  ;;  %v807_v35 = vsel %vm569_vm2, %v802_v32, 0 }
 0x2b0   : > { %1499 = vmatprep.mubr.msk.bf16.mxu0 %vm1733_vm1, %v1732_v9 }
 0x2b2   : > { %v800_v34 = vpop.permute.xlu1 %799 }
 0x2b3   : > { %1506 = vmatmul.mubr.msk.bf16.vlgmr.msra.gmra.mrb[0].mxu1 %vm569_vm2, %v681_v33 }
 0x2b4   : > { %1516 = vmatpush3.bf16.xpose.msra.mxu1 %v807_v35  ;;  %1517 = vmatprep.mubr.msk.bf16.mxu1 %vm1733_vm1, %v1732_v9 }
 0x2b5   : > { %1527 = vmatprep.subr.bf16.mxu1 %v1732_v9 }
 0x2b6   : > { %v921_v36 = vpop.permute.xlu1 %920 }
 0x2b7   : > { %v926_v37 = vsel %vm569_vm2, %v921_v36, 0 }
 0x2ba   : > { %v919_v38 = vpop.permute.xlu1 %918 }
 0x2bb   : > { %1518 = vmatmul.mubr.msk.bf16.vlgmr.msra.gmra.mrb[4].mxu1 %vm569_vm2, %v800_v34 }
 0x2bc   : > { %1528 = vmatpush3.bf16.xpose.msra.mxu1 %v926_v37  ;;  %1529 = vmatprep.mubr.msk.bf16.mxu1 %vm1733_vm1, %v1732_v9 }
 0x2bd   : > { %1539 = vmatprep.subr.bf16.mxu1 %v1732_v9 }
 0x2c3   : > { %1530 = vmatmul.mubr.msk.bf16.vlgmr.msra.gmra.mrb[8].mxu1 %vm569_vm2, %v919_v38 }
 0x2c4   : > { %1543 = vmatprep.mubr.msk.bf16.mxu1 %vm1733_vm1, %v1732_v9 }
 0x382   : > { %v610_v40 = vpop.f32.mrb[4].mxu0 }
 0x383   : > { %v611_v41 = vadd.f32 %v610_v40, %v565_v39  ;;  %v1495_v42 = vpop.f32.mrb[5].mxu0 }
 0x384   : > { %v613_v43 = vpop.f32.mrb[6].mxu0 }
 0x385   : > { %v1496_v44 = vpop.f32.mrb[7].mxu0  ;;  %v616_v45 = vsel %vm569_vm2, %v611_v41, -inf }
 0x386   : > { %v724_v46 = vpop.f32.mrb[0].mxu1  ;;  %617 = vmax.xlane.f32.xlu1 %v616_v45 }
 0x387   : > { %v725_v47 = vadd.f32 %v724_v46, %v565_v39  ;;  %v1507_v48 = vpop.f32.mrb[1].mxu1 }
 0x388   : > { %v727_v49 = vpop.f32.mrb[2].mxu1 }
 0x389   : > { %v1508_v50 = vpop.f32.mrb[3].mxu1  ;;  %v730_v51 = vsel %vm569_vm2, %v725_v47, -inf }
 0x38a   : > { %731 = vmax.xlane.f32.xlu0 %v730_v51 }
 0x38e   : > { %v843_v52 = vpop.f32.mrb[4].mxu1 }
 0x38f   : > { %v1519_v53 = vpop.f32.mrb[5].mxu1  ;;  %v844_v62 = vadd.f32 %v843_v52, %v565_v39 }
 0x390   : > { %v846_v54 = vpop.f32.mrb[6].mxu1 }
 0x391   : > { %v1520_v55 = vpop.f32.mrb[7].mxu1  ;;  %v849_v63 = vsel %vm569_vm2, %v844_v62, -inf  ;;  %v1632_v54 = vld [vmem:[%s2100_s6] sm:$0xff]  }
 0x392   : > { %1540 = vmatpush3.bf16.msra.mxu1 %v1632_v54  ;;  %v1428_v54 = vld [vmem:[%s2107_s13] ss:$0 sm:$0xff] }
 0x393   : > { %1541 = vmatprep.subr.bf16.mxu1 %v1732_v9 }
 0x396   : > { %v962_v56 = vpop.f32.mrb[8].mxu1 }
 0x397   : > { %v963_v57 = vadd.f32 %v962_v56, %v565_v39  ;;  %v1531_v58 = vpop.f32.mrb[9].mxu1  ;;  %627 = vrot.lane.b32.xlu1 %v1909_v26, %s1741_s28 }
 0x398   : > { %v965_v59 = vpop.f32.mrb[10].mxu1  ;;  %v1633_v58 = vld [vmem:[%s2100_s6 + $0x8] sm:$0xff]  }
 0x399   : > { %v1532_v60 = vpop.f32.mrb[11].mxu1  ;;  %v968_v61 = vsel %vm569_vm2, %v963_v57, -inf  ;;  %1542 = vmatpush3.bf16.msra.mxu1 %v1633_v58 }
 0x39a   : > { %969 = vmax.xlane.f32.xlu0 %v968_v61  ;;  %1555 = vmatprep.subr.bf16.mxu1 %v1732_v9 }
 0x3b0   : > { %741 = vrot.lane.b32.xlu0 %v1909_v26, %s1742_s18 }
 0x3bb   : > { %850 = vmax.xlane.f32.xlu1 %v849_v63 }
 0x3cc   : > { %860 = vrot.lane.b32.xlu1 %v1909_v26, %s1743_s20  ;;  %s1746_s20 = smov 16  }
 0x3d0   : > { %979 = vrot.lane.b32.xlu1 %v1909_v26, %s1744_s21  ;;  %s1747_s21 = smov 24  }
 0x413   : > { %v618_v0 = vpop.xlane.xlu1 %617 }
 0x414   : > { %v619_v2 = vsub.f32 %v611_v41, %v618_v0 }
 0x416   : > { %v620_v3 = vmul.f32 1.442695, %v619_v2 }
 0x417   : > { %v732_v4 = vpop.xlane.xlu0 %731  ;;  %v628_v5 = vpop.permute.xlu1 %627 }
 0x418   : > { %1646 = vpow2.f32 %v620_v3  ;;  %v733_v6 = vsub.f32 %v725_v47, %v732_v4  ;;  %v634_v7 = vsel %vm632_vm3, %v628_v5, 0 }
 0x419   : > { %1498 = vmatpush3.bf16.msra.mxu0 %v634_v7 }
 0x41a   : > { %v734_v8 = vmul.f32 1.442695, %v733_v6  ;;  %1509 = vmatprep.subr.bf16.mxu0 %v1732_v9 }
 0x41c   : > { %1648 = vpow2.f32 %v734_v8 }
 0x422   : > { %v1647_v10 = vpop.eup %1646 }
 0x423   : > { %v626_v11 = vpack.c.bf16 %v1647_v10, %v1647_v10  ;;  %v622_v22 = vsel %vm569_vm2, %v1647_v10, 0.0  ;;  %v1422_v10 = vld [vmem:[%s2101_s7] ss:$0 sm:$0xff] }
 0x425   : > { %1500 = vmatmul.mubr.msk.bf16.vlgmr.msra.gmra.mrb[8].mxu0 %vm569_vm2, %v626_v11 }
 0x426   : > { %v1649_v12 = vpop.eup %1648  ;;  %1511 = vmatprep.mubr.msk.bf16.mxu0 %vm1733_vm1, %v1732_v9 }
 0x427   : > { %v970_v13 = vpop.xlane.xlu0 %969  ;;  %v736_v14 = vsel %vm569_vm2, %v1649_v12, 0.0  ;;  %v740_v19 = vpack.c.bf16 %v1649_v12, %v1649_v12 }
 0x428   : > { %v971_v15 = vsub.f32 %v963_v57, %v970_v13  ;;  %737 = vadd.xlane.f32.xlu0 %v736_v14 }
 0x42a   : > { %v972_v16 = vmul.f32 1.442695, %v971_v15 }
 0x42b   : > { %v742_v17 = vpop.permute.xlu0 %741 }
 0x42c   : > { %1650 = vpow2.f32 %v972_v16  ;;  %v747_v18 = vsel %vm632_vm3, %v742_v17, 0 }
 0x42d   : > { %1510 = vmatpush3.bf16.msra.mxu0 %v747_v18 }
 0x42e   : > { %1521 = vmatprep.subr.bf16.mxu0 %v1732_v9 }
 0x430   : > { %1512 = vmatmul.mubr.msk.bf16.vlgmr.msra.gmra.mrb[12].mxu0 %vm569_vm2, %v740_v19 }
 0x431   : > { %1523 = vmatprep.mubr.msk.bf16.mxu0 %vm1733_vm1, %v1732_v9 }
 0x436   : > { %v1651_v20 = vpop.eup %1650 }
 0x437   : > { %v974_v21 = vsel %vm569_vm2, %v1651_v20, 0.0  ;;  %v978_v33 = vpack.c.bf16 %v1651_v20, %v1651_v20 }
 0x438   : > { %975 = vadd.xlane.f32.xlu0 %v974_v21 }
 0x43c   : > { %623 = vadd.xlane.f32.xlu0 %v622_v22 }
 0x448   : > { %v851_v23 = vpop.xlane.xlu1 %850 }
 0x449   : > { %v852_v24 = vsub.f32 %v844_v62, %v851_v23  ;;  %v1634_v23 = vld [vmem:[%s2104_s10] sm:$0xff]  }
 0x44b   : > { %v853_v25 = vmul.f32 1.442695, %v852_v24 }
 0x44c   : > { %v861_v26 = vpop.permute.xlu1 %860 }
 0x44d   : > { %1652 = vpow2.f32 %v853_v25  ;;  %v866_v27 = vsel %vm632_vm3, %v861_v26, 0 }
 0x44e   : > { %1522 = vmatpush3.bf16.msra.mxu0 %v866_v27 }
 0x44f   : > { %1533 = vmatprep.subr.bf16.mxu0 %v1732_v9 }
 0x450   : > { %v980_v29 = vpop.permute.xlu1 %979 }
 0x451   : > { %v985_v32 = vsel %vm632_vm3, %v980_v29, 0 }
 0x457   : > { %v1653_v28 = vpop.eup %1652 }
 0x458   : > { %v855_v30 = vsel %vm569_vm2, %v1653_v28, 0.0  ;;  %v859_v31 = vpack.c.bf16 %v1653_v28, %v1653_v28  ;;  %v1426_v28 = vld [vmem:[%s2102_s8] ss:$0 sm:$0xff] }
 0x459   : > { %856 = vadd.xlane.f32.xlu1 %v855_v30  ;;  %v1427_v30 = vld [vmem:[%s2103_s9] ss:$0 sm:$0xff] }
 0x45a   : > { %1524 = vmatmul.mubr.msk.bf16.vlgmr.msra.gmra.mrb[16].mxu0 %vm569_vm2, %v859_v31 }
 0x45b   : > { %1534 = vmatpush3.bf16.msra.mxu0 %v985_v32  ;;  %1535 = vmatprep.mubr.msk.bf16.mxu0 %vm1733_vm1, %v1732_v9 }
 0x45c   : > { %1547 = vmatprep.subr.bf16.mxu0 %v1732_v9 }
 0x462   : > { %1536 = vmatmul.mubr.msk.bf16.vlgmr.msra.gmra.mrb[20].mxu0 %vm569_vm2, %v978_v33 }
 0x463   : > { %1551 = vmatprep.mubr.msk.bf16.mxu0 %vm1733_vm1, %v1732_v9  ;;  %1548 = vmatpush3.bf16.msra.mxu0 %v1634_v23 }
 0x464   : > { %1549 = vmatprep.subr.bf16.mxu0 %v1732_v9 }
 0x4b5   : > { %v738_v34 = vpop.xlane.xlu0 %737 }
 0x4c5   : > { %v976_v35 = vpop.xlane.xlu0 %975 }
 0x4c9   : > { %v624_v36 = vpop.xlane.xlu0 %623 }
 0x4ca   : > { %1654 = vrcp.f32 %v624_v36  ;;  %v1638_v36 = vld [vmem:[%s2106_s12 + $0x10] sm:$0xff]  }
 0x4cb   : > { %1656 = vrcp.f32 %v738_v34  ;;  %v1636_v34 = vld [vmem:[%s2106_s12] sm:$0xff]  }
 0x4d4   : > { %v1655_v37 = vpop.eup %1654 }
 0x4d5   : > { %v1657_v44 = vpop.eup %1656 }
 0x4e6   : > { %v857_v51 = vpop.xlane.xlu1 %856 }
 0x4e7   : > { %1658 = vrcp.f32 %v857_v51 }
 0x4e8   : > { %1660 = vrcp.f32 %v976_v35  ;;  %v1637_v35 = vld [vmem:[%s2106_s12 + $0x8] sm:$0xff]  }
 0x4f1   : > { %v1659_v52 = vpop.eup %1658 }
 0x4f2   : > { %v1661_v61 = vpop.eup %1660 }
 0x4f8   : > { %v670_v38 = vpop.f32.mrb[8].mxu0 }
 0x4f9   : > { %v676_v39 = vmul.f32 %v1655_v37, %v670_v38  ;;  %v1501_v40 = vpop.f32.mrb[9].mxu0  ;;  %v1639_v37 = vld [vmem:[%s2106_s12 + $0x18] sm:$0xff]   ;;  %v1640_v38 = vld [vmem:[%s2106_s12 + $0x20] sm:$0xff]  }
 0x4fa   : > { %v673_v41 = vpop.f32.mrb[10].mxu0  ;;  %v1642_v40 = vld [vmem:[%s2106_s12 + $0x30] sm:$0xff]  }
 0x4fb   : > { %v677_v42 = vpack.c.bf16 %v676_v39, %v676_v39  ;;  %v1502_v43 = vpop.f32.mrb[11].mxu0  ;;  %v1641_v39 = vld [vmem:[%s2106_s12 + $0x28] sm:$0xff]   ;;  %v1643_v41 = vld [vmem:[%s2106_s12 + $0x38] sm:$0xff]  }
 0x4fd   : > { %679 = vst.msk [vmem:[#allocation2] sm:$0xf] %vm678_vm4, %v677_v42  ;;  %v1429_v42 = vld [vmem:[%s2105_s11] ss:$0 sm:$0xff] }
 0x503   : > { %v783_v45 = vpop.f32.mrb[12].mxu0 }
 0x504   : > { %v789_v46 = vmul.f32 %v1657_v44, %v783_v45  ;;  %v1513_v47 = vpop.f32.mrb[13].mxu0 }
 0x505   : > { %v786_v48 = vpop.f32.mrb[14].mxu0 }
 0x506   : > { %v1446_v49 = vpack.c.bf16 %v789_v46, %v789_v46  ;;  %v1514_v50 = vpop.f32.mrb[15].mxu0 }
 0x508   : > { %794 = vrot.lane.b32.xlu1 %v1446_v49, %s1745_s25  ;;  %s1748_s25 = smov [#allocation3]  }
 0x509   : > { %s1672_s26 = sshll.u32 %s1748_s25, 4  ;;  %s1673_s26 = int_to_ptr.vmem [resolvable:$false] %s1672_s26 }
 0x50a   : > { %s1674_s3 = scalar_lea.vmem %s1673_s26, 128 }
 0x52d   : > { %v902_v53 = vpop.f32.mrb[16].mxu0 }
 0x52e   : > { %v908_v55 = vmul.f32 %v1659_v52, %v902_v53  ;;  %v1525_v56 = vpop.f32.mrb[17].mxu0 }
 0x52f   : > { %v905_v57 = vpop.f32.mrb[18].mxu0 }
 0x530   : > { %v1447_v59 = vpack.c.bf16 %v908_v55, %v908_v55  ;;  %v1526_v60 = vpop.f32.mrb[19].mxu0 }
 0x532   : > { %913 = vrot.lane.b32.xlu0 %v1447_v59, %s1746_s20 }
 0x535   : > { %v1021_v62 = vpop.f32.mrb[20].mxu0 }
 0x536   : > { %v1027_v63 = vmul.f32 %v1661_v61, %v1021_v62  ;;  %v1537_v0 = vpop.f32.mrb[21].mxu0 }
 0x537   : > { %v1024_v2 = vpop.f32.mrb[22].mxu0 }
 0x538   : > { %v1448_v3 = vpack.c.bf16 %v1027_v63, %v1027_v63  ;;  %v1538_v4 = vpop.f32.mrb[23].mxu0 }
 0x53a   : > { %1032 = vrot.lane.b32.xlu1 %v1448_v3, %s1747_s21  ;;  %s456_s21 = sand.u32 1, %s1722_s30  }
 0x53b   : > { %s1403_s0 = sshll.u32 %s456_s21, 2  ;;  %s1327_s17 = scalar_lea.sflag [#allocation4], %s456_s21 }
 0x53c   : > { %s458_s28 = scalar_lea.vmem [#allocation3], %s1403_s0 }
 0x53d   : > { %s1340_s18 = sshll.u32 %s458_s28, 4  ;;  %s2054_s18 = int_to_ptr.vmem [resolvable:$true] %s1340_s18 }
 0x53e   : > { %s1668_s0 = scalar_lea.vmem %s2054_s18, 64  ;;  %p1675_p0 = scmp.lt.s32.totalorder %s2054_s18, %s1673_s26 }
 0x53f   : > { %p1669_p11 = scmp.ne.s32.totalorder %s2054_s18, %s1668_s0  ;;  %p1676_p1 = scmp.lt.s32.totalorder %s1674_s3, %s1668_s0 }
 0x541   : > { %p1670_p12 = pnand %p1669_p11, %p1862_p5  ;;  %p1677_p2 = por %p1676_p1, %p1675_p0 }
 0x543   : > { %p1671_p13 = pneg %p1670_p12 }
 0x545   : > { %p1678_p3 = pnand %p1677_p2, %p1671_p13 }
 0x57a   : > { %v795_v5 = vpop.permute.xlu1 %794 }
 0x57b   : > { %798 = vst.msk [vmem:[#allocation2] sm:$0xf] %vm797_vm5, %v795_v5 }
 0x5a4   : > { %v914_v6 = vpop.permute.xlu0 %913 }
 0x5a5   : > { %917 = vst.msk [vmem:[#allocation2] sm:$0xf] %vm916_vm6, %v914_v6 }
 0x5ac   : > { %v1033_v7 = vpop.permute.xlu1 %1032 }
 0x5ad   : > { %1036 = vst.msk [vmem:[#allocation2] sm:$0xf] %vm1035_vm7, %v1033_v7 }
 0x5b4   : > { %v1037_v8 = vld [vmem:[#allocation2] sm:$0xf] }
 0x5b5   : > { %1544 = vmatmul.mubr.msk.bf16.vlgmr.msra.gmra.mrb[12].mxu1 %vm468_vm0, %v1037_v8 }
 0x5b6   : > { %1571 = vmatprep.mubr.msk.bf16.mxu1 %vm1733_vm1, %v1732_v9  ;;  %1556 = vmatpush3.bf16.msra.mxu1 %v1636_v34 }
 0x5b7   : > { %1557 = vmatprep.subr.bf16.mxu1 %v1732_v9 }
 0x5ba   : > { %1558 = vmatpush3.bf16.msra.mxu1 %v1637_v35 }
 0x5bb   : > { %1559 = vmatprep.subr.bf16.mxu1 %v1732_v9 }
 0x5be   : > { %1560 = vmatpush3.bf16.msra.mxu1 %v1638_v36 }
 0x5bf   : > { %1561 = vmatprep.subr.bf16.mxu1 %v1732_v9 }
 0x5c2   : > { %1562 = vmatpush3.bf16.msra.mxu1 %v1639_v37 }
 0x5c3   : > { %1563 = vmatprep.subr.bf16.mxu1 %v1732_v9 }
 0x5c6   : > { %1564 = vmatpush3.bf16.msra.mxu1 %v1640_v38 }
 0x5c7   : > { %1565 = vmatprep.subr.bf16.mxu1 %v1732_v9 }
 0x5ca   : > { %1566 = vmatpush3.bf16.msra.mxu1 %v1641_v39 }
 0x5cb   : > { %1567 = vmatprep.subr.bf16.mxu1 %v1732_v9 }
 0x5ce   : > { %1568 = vmatpush3.bf16.msra.mxu1 %v1642_v40 }
 0x5cf   : > { %1569 = vmatprep.subr.bf16.mxu1 %v1732_v9 }
 0x5d2   : > { %1570 = vmatpush3.bf16.msra.mxu1 %v1643_v41 }
 0x688   : > { %v1098_v11 = vpop.f32.mrb[12].mxu1 }
 0x689   : > { %v1099_v12 = vadd.f32 %v1422_v10, %v1098_v11  ;;  %v1545_v13 = vpop.f32.mrb[13].mxu1 }
 0x68a   : > { %v1101_v14 = vpop.f32.mrb[14].mxu1 }
 0x68b   : > { %v1989_v15 = vadd.f32 %v1099_v12, %v1877_v1  ;;  %v1546_v16 = vpop.f32.mrb[15].mxu1  ;;  %v1635_v1 = vld [vmem:[%s2104_s10 + $0x8] sm:$0xff]  }
 0x68c   : > { %1550 = vmatpush3.bf16.msra.mxu0 %v1635_v1 }
 0x68d   : > { %v1107_v17 = vsel %vm468_vm0, %v1989_v15, 0.0  ;;  %v1142_v55 = vadd.f32 %v1428_v54, %v1989_v15 }
 0x68e   : > { %1108 = vadd.xlane.f32.xlu1 %v1107_v17 }
 0x71b   : > { %v1109_v18 = vpop.xlane.xlu1 %1108 }
 0x71c   : > { %v1110_v19 = vmul.f32 0.03125, %v1109_v18 }
 0x71e   : > { %v1111_v20 = vsub.f32 %v1989_v15, %v1110_v19 }
 0x720   : > { %v1112_v21 = vmul.f32 %v1111_v20, %v1111_v20 }
 0x722   : > { %v1113_v22 = vsel %vm468_vm0, %v1112_v21, 0.0 }
 0x723   : > { %1114 = vadd.xlane.f32.xlu0 %v1113_v22 }
 0x7b0   : > { %v1115_v24 = vpop.xlane.xlu0 %1114 }
 0x7b1   : > { %v1116_v25 = vmul.f32 0.03125, %v1115_v24 }
 0x7b3   : > { %v1117_v26 = vadd.f32 1e-05, %v1116_v25 }
 0x7b5   : > { %1662 = vrsqrt.f32 %v1117_v26 }
 0x7bf   : > { %v1663_v27 = vpop.eup %1662 }
 0x7c0   : > { %v1119_v29 = vmul.f32 %v1663_v27, %v1111_v20 }
 0x7c2   : > { %v1126_v31 = vmul.f32 %v1426_v28, %v1119_v29 }
 0x7c4   : > { %v1133_v32 = vadd.f32 %v1427_v30, %v1126_v31 }
 0x7c6   : > { %v1134_v33 = vpack.c.bf16 %v1133_v32, %v1133_v32 }
 0x7c8   : > { %1552 = vmatmul.mubr.msk.bf16.vlgmr.msra.gmra.mrb[24].mxu0 %vm468_vm0, %v1134_v33 }
 0x89b   : > { %v1203_v43 = vpop.f32.mrb[24].mxu0 }
 0x89c   : > { %v1204_v44 = vadd.f32 %v1429_v42, %v1203_v43  ;;  %v1553_v45 = vpop.f32.mrb[25].mxu0 }
 0x89d   : > { %v1206_v46 = vpop.f32.mrb[26].mxu0 }
 0x89e   : > { %v1433_v47 = vmul.f32 -1.702, %v1204_v44  ;;  %v1554_v48 = vpop.f32.mrb[27].mxu0 }
 0x8a0   : > { %v1211_v49 = vmul.f32 1.442695, %v1433_v47 }
 0x8a2   : > { %1664 = vpow2.f32 %v1211_v49 }
 0x8ac   : > { %v1665_v9 = vpop.eup %1664 }
 0x8ad   : > { %v1213_v50 = vadd.f32 1.0, %v1665_v9 }
 0x8af   : > { %1666 = vrcp.f32 %v1213_v50 }
 0x8b9   : > { %v1667_v51 = vpop.eup %1666 }
 0x8ba   : > { %v1216_v52 = vmul.f32 %v1667_v51, %v1204_v44 }
 0x8bc   : > { %v1217_v53 = vpack.c.bf16 %v1216_v52, %v1216_v52 }
 0x8be   : > { %1572 = vmatmul.mubr.bf16.vlgmr.msra.gmra.mrb[16].mxu1 %v1217_v53 }
 0x991   : > { %v1316_v56 = vpop.f32.mrb[16].mxu1 }
 0x992   : > { %v1322_v57 = vadd.f32 %v1316_v56, %v1142_v55  ;;  %v1573_v58 = vpop.f32.mrb[17].mxu1 }
 0x993   : > { %v1319_v59 = vpop.f32.mrb[18].mxu1 }
 0x994   : > { %v1323_v60 = vpack.c.bf16 %v1322_v57, %v1322_v57  ;;  %v1574_v61 = vpop.f32.mrb[19].mxu1 }
 0x996   : > { %1325 = vst.msk [vmem:[%s458_s28] sm:$0xf] %vm1324_vm8, %v1323_v60 }
 0x997   : > { %1681 = shalt.err (!%p1678_p3)
}
 0x998   : > { %s1682_s1 = scalar_lea.hbm %s2052_s2, 64  ;;  %s1686_s28 = scalar_lea.hbm %s2108_s14, 128 }
 0x999   : > { %p1683_p4 = scmp.ne.s32.totalorder %s2052_s2, %s1682_s1  ;;  %p1687_p9 = scmp.lt.u32.totalorder %s2052_s2, %s2108_s14 }
 0x99a   : > { %p1688_p10 = scmp.lt.u32.totalorder %s1686_s28, %s1682_s1  ;;  %p1690_p12 = scmp.lt.u32.totalorder %s1682_s1, %s2052_s2 }
 0x99b   : > { %p1684_p7 = pnand %p1683_p4, %p1862_p5 }
 0x99c   : > { %p1689_p11 = por %p1688_p10, %p1687_p9 }
 0x99d   : > { %p1685_p8 = pneg %p1684_p7 }
 0x99e   : > { %p1691_p13 = por %p1690_p12, %p1689_p11 }
 0x9a0   : > { %p1692_p0 = pnand %p1691_p13, %p1685_p8 }
 0x9a2   : > { %1695 = shalt.err (!%p1692_p0)
}
 0x9a3   : > { %1575 = dma.vmem_to_hbm [thread:$0]  (%p1862_p5), %s2054_s18, 64, %s2052_s2, %s1327_s17  }
 0x9a4 PF: > { %p1581_p1 = scmp.ge.s32.totalorder %s1730_s16, 2  ;;  %s1352_s3 = sand.u32 1, %s1718_s29  }
 0x9a5   : > { %s1353_s0 = scalar_lea.sflag [#allocation4], %s1352_s3 }
 0x9a6   : > { %p1578_p2 = pnand %p1581_p1, %p1866_p6 }
 0x9a8   : > { %1713 = dma.done.wait (!%p1578_p2), %s1353_s0, 64  }
 0x9a9   : > { %1715 = vsyncadd (!%p1578_p2), %s1353_s0, 4294967232  ;;  %p24_p3 = scmp.ge.s32.totalorder %s1849_s19, 4   ;;  %s2119_s29 = smov %s1722_s30 }
 0x9aa   : > { %s2120_s30 = smov %s1726_s15  ;;  %s2121_s15 = smov %s1860_s22 }
 0x9ab   : > { %s2122_s16 = smov %s1849_s19  ;;  %26 = sbr.rel (!%p24_p3) target bundleno = 8 (0x8), region = 111 }
 0x9b2   :  { %1358 = vsyncpa [#allocation4], 1 }
 0x9b3   :  { %1360 = vsyncpa [#allocation4 + $0x1], 1 }

</bundles_post_ra>
